<compile_context>
chip_gen: v7x
topology: tpu7x:2x2x1
jax: 0.10.0
libtpu: 0.0.40
codegen_flags: <defaults>
</compile_context>

<pallas_src>
import jax
import jax.numpy as jnp
from jax import lax
from jax.experimental import pallas as pl
from jax.experimental.pallas import tpu as pltpu


_BETA = 500.0
_THRESHOLD = 20.0
_INV_BETA = 1.0 / _BETA


def _softplus_beta(x):
    """PyTorch nn.Softplus(beta=500): (1/beta)*log1p(exp(beta*x)), linear past threshold."""
    z = x * _BETA
    z_safe = jnp.minimum(z, _THRESHOLD)            # keep exp() in range on unselected branch
    sp = jnp.log1p(jnp.exp(z_safe)) * _INV_BETA    # multiply by constant 1/beta (no divide)
    return jnp.where(z > _THRESHOLD, x, sp)


def diffusion_kernel(x_ref, w1_ref, b1_ref, w2_ref, b2_ref, o_ref):
    # x_ref: (TM, D)   w1_ref: (D, H)   b1_ref: (1, H)
    # w2_ref: (1, H)   b2_ref: (1, 1)   o_ref: (1, 1, TM)      (H = 2*D)
    x = x_ref[...]
    # fc1 on the MXU + softplus(beta=500)
    h = jnp.dot(x, w1_ref[...], preferred_element_type=jnp.float32) + b1_ref[...]
    h = _softplus_beta(h)                                          # (TM, H)
    # fc2: contract (1,H) with (TM,H) over H -> lane-dense (1, TM) row.
    # Same contraction pattern as q @ k.T; no explicit transpose materialized,
    # and the store is a full-lane slab instead of a masked (TM,1) column.
    y = lax.dot_general(w2_ref[...], h,
                        dimension_numbers=(((1,), (1,)), ((), ())),
                        preferred_element_type=jnp.float32) + b2_ref[...]
    o_ref[...] = _softplus_beta(y).reshape(o_ref.shape)            # (1, 1, TM)


def _round_up(n, mult):
    return ((n + mult - 1) // mult) * mult


def diffusion_forward(x, w1, b1, w2, b2, *, block_rows=4096):
    """x: (N, D) f32; w1: (D, H); b1: (1, H); w2: (H, 1); b2: (1, 1); H = 2*D."""
    n, d = x.shape
    h_dim = w1.shape[1]
    # Row tile: multiple of 8 sublanes; tiny batches collapse to a single block.
    tm = min(block_rows, _round_up(n, 8))
    grid_n = pl.cdiv(n, tm)
    w2_row = w2.reshape(1, h_dim)     # (1, H) so the kernel emits a lane-dense row

    out = pl.pallas_call(
        diffusion_kernel,
        out_shape=jax.ShapeDtypeStruct((grid_n, 1, tm), jnp.float32),
        grid=(grid_n,),
        in_specs=[
            pl.BlockSpec((tm, d), lambda i: (i, 0)),      # x: pipelined over row tiles
            pl.BlockSpec((d, h_dim), lambda i: (0, 0)),   # w1: fetched once, stays in VMEM
            pl.BlockSpec((1, h_dim), lambda i: (0, 0)),   # b1
            pl.BlockSpec((1, h_dim), lambda i: (0, 0)),   # w2 (row layout)
            pl.BlockSpec((1, 1), lambda i: (0, 0)),       # b2
        ],
        out_specs=pl.BlockSpec((1, 1, tm), lambda i: (i, 0, 0)),
        compiler_params=pltpu.CompilerParams(
            dimension_semantics=("parallel",)),           # shard row tiles across TCs
    )(x, w1, b1, w2_row, b2)

    # (grid_n, 1, tm) -> flat rows; drop the padded tail of the last (ragged) tile.
    return out.reshape(grid_n * tm, 1)[:n]


def init_params(key, p, m):
    """Deterministic init matching the module's shapes (uniform like nn.Linear)."""
    d_in = m * (p + 1) + 1
    d_hid = int(2 * d_in)
    k1, k2, k3, k4 = jax.random.split(key, 4)
    bound1 = 1.0 / jnp.sqrt(d_in)
    bound2 = 1.0 / jnp.sqrt(d_hid)
    # Stored pre-transposed: (in_features, out_features).
    w1 = jax.random.uniform(k1, (d_in, d_hid), jnp.float32, -bound1, bound1)
    b1 = jax.random.uniform(k2, (1, d_hid), jnp.float32, -bound1, bound1)
    w2 = jax.random.uniform(k3, (d_hid, 1), jnp.float32, -bound2, bound2)
    b2 = jax.random.uniform(k4, (1, 1), jnp.float32, -bound2, bound2)
    return w1, b1, w2, b2


def reference_forward(x, w1, b1, w2, b2):
    h = _softplus_beta(x @ w1 + b1)
    return _softplus_beta(h @ w2 + b2)


if __name__ == "__main__":
    p, m = 3, 4                        # D = m*(p+1)+1 = 17, hidden = 34
    batch = 100
    d_in = m * (p + 1) + 1

    key = jax.random.PRNGKey(0)
    kx, kp = jax.random.split(key)
    x = jax.random.normal(kx, (batch, d_in), dtype=jnp.float32)
    w1, b1, w2, b2 = init_params(kp, p, m)

    ref = reference_forward(x, w1, b1, w2, b2)

    # Exercise both the multi-tile path (grid=4, ragged last tile) and the single-tile path.
    out_tiled = jax.block_until_ready(
        diffusion_forward(x, w1, b1, w2, b2, block_rows=32))
    out_single = jax.block_until_ready(
        diffusion_forward(x, w1, b1, w2, b2))

    assert out_tiled.shape == (batch, 1) and out_single.shape == (batch, 1)
    assert jnp.allclose(out_tiled, ref, atol=1e-5, rtol=1e-4), (out_tiled, ref)
    assert jnp.allclose(out_single, ref, atol=1e-5, rtol=1e-4), (out_single, ref)

    print("KERNEL_OK")
</pallas_src>

<mosaic_0001>
module attributes {stable_mosaic.version = 11 : i64} {
  func.func @diffusion_kernel(%arg0: i32, %arg1: memref<32x17xf32, #tpu.memory_space<vmem>>, %arg2: memref<17x34xf32, #tpu.memory_space<vmem>>, %arg3: memref<1x34xf32, #tpu.memory_space<vmem>>, %arg4: memref<1x34xf32, #tpu.memory_space<vmem>>, %arg5: memref<1x1xf32, #tpu.memory_space<vmem>>, %arg6: memref<1x1x32xf32, #tpu.memory_space<vmem>>) attributes {dimension_semantics = [#tpu.dimension_semantics<parallel>], iteration_bounds = array<i64: 4>, scalar_prefetch = 0 : i64, scratch_operands = 0 : i64, tpu.core_type = #tpu.core_type<tc>, window_params = [{transform_indices = @transform_0, window_bounds = array<i64: 32, 17>}, {pipeline_mode = #tpu.pipeline_mode<synchronous>, transform_indices = @transform_1, window_bounds = array<i64: 17, 34>}, {pipeline_mode = #tpu.pipeline_mode<synchronous>, transform_indices = @transform_2, window_bounds = array<i64: 1, 34>}, {pipeline_mode = #tpu.pipeline_mode<synchronous>, transform_indices = @transform_3, window_bounds = array<i64: 1, 34>}, {pipeline_mode = #tpu.pipeline_mode<synchronous>, transform_indices = @transform_4, window_bounds = array<i64: 1, 1>}, {transform_indices = @transform_5, window_bounds = array<i64: 1, 1, 32>}]} {
    %c0 = arith.constant 0 : index
    %c0_0 = arith.constant 0 : index
    %0 = vector.load %arg1[%c0, %c0_0] : memref<32x17xf32, #tpu.memory_space<vmem>>, vector<32x17xf32>
    %c0_1 = arith.constant 0 : index
    %c0_2 = arith.constant 0 : index
    %1 = vector.load %arg2[%c0_1, %c0_2] : memref<17x34xf32, #tpu.memory_space<vmem>>, vector<17x34xf32>
    %cst = arith.constant dense<0.000000e+00> : vector<32x34xf32>
    %2 = tpu.matmul %0, %1, %cst {dimension_numbers = #tpu.dot_dimension_numbers<[1], [0], [0], [1], [0, 0, 1, 1], [], []>} : vector<32x17xf32>, vector<17x34xf32>, vector<32x34xf32> -> vector<32x34xf32>
    %c0_3 = arith.constant 0 : index
    %c0_4 = arith.constant 0 : index
    %3 = vector.load %arg3[%c0_3, %c0_4] : memref<1x34xf32, #tpu.memory_space<vmem>>, vector<1x34xf32>
    %4 = vector.broadcast %3 : vector<1x34xf32> to vector<32x34xf32>
    %5 = arith.addf %2, %4 : vector<32x34xf32>
    %cst_5 = arith.constant 5.000000e+02 : f32
    %6 = vector.broadcast %cst_5 : f32 to vector<32x34xf32>
    %7 = arith.mulf %5, %6 : vector<32x34xf32>
    %cst_6 = arith.constant 2.000000e+01 : f32
    %8 = vector.broadcast %cst_6 : f32 to vector<32x34xf32>
    %9 = arith.minimumf %7, %8 : vector<32x34xf32>
    %10 = math.exp %9 : vector<32x34xf32>
    %11 = math.log1p %10 : vector<32x34xf32>
    %cst_7 = arith.constant 2.000000e-03 : f32
    %12 = vector.broadcast %cst_7 : f32 to vector<32x34xf32>
    %13 = arith.mulf %11, %12 : vector<32x34xf32>
    %cst_8 = arith.constant 2.000000e+01 : f32
    %14 = vector.broadcast %cst_8 : f32 to vector<32x34xf32>
    %15 = arith.cmpf ogt, %7, %14 : vector<32x34xf32>
    %16 = arith.select %15, %5, %13 : vector<32x34xi1>, vector<32x34xf32>
    %c0_9 = arith.constant 0 : index
    %c0_10 = arith.constant 0 : index
    %17 = vector.load %arg4[%c0_9, %c0_10] : memref<1x34xf32, #tpu.memory_space<vmem>>, vector<1x34xf32>
    %cst_11 = arith.constant dense<0.000000e+00> : vector<1x32xf32>
    %18 = tpu.matmul %17, %16, %cst_11 {dimension_numbers = #tpu.dot_dimension_numbers<[1], [1], [0], [0], [0, 0, 1, 0], [], []>} : vector<1x34xf32>, vector<32x34xf32>, vector<1x32xf32> -> vector<1x32xf32>
    %c0_12 = arith.constant 0 : index
    %c0_13 = arith.constant 0 : index
    %19 = vector.load %arg5[%c0_12, %c0_13] : memref<1x1xf32, #tpu.memory_space<vmem>>, vector<1x1xf32>
    %20 = vector.broadcast %19 : vector<1x1xf32> to vector<1x32xf32>
    %21 = arith.addf %18, %20 : vector<1x32xf32>
    %cst_14 = arith.constant 5.000000e+02 : f32
    %22 = vector.broadcast %cst_14 : f32 to vector<1x32xf32>
    %23 = arith.mulf %21, %22 : vector<1x32xf32>
    %cst_15 = arith.constant 2.000000e+01 : f32
    %24 = vector.broadcast %cst_15 : f32 to vector<1x32xf32>
    %25 = arith.minimumf %23, %24 : vector<1x32xf32>
    %26 = math.exp %25 : vector<1x32xf32>
    %27 = math.log1p %26 : vector<1x32xf32>
    %cst_16 = arith.constant 2.000000e-03 : f32
    %28 = vector.broadcast %cst_16 : f32 to vector<1x32xf32>
    %29 = arith.mulf %27, %28 : vector<1x32xf32>
    %cst_17 = arith.constant 2.000000e+01 : f32
    %30 = vector.broadcast %cst_17 : f32 to vector<1x32xf32>
    %31 = arith.cmpf ogt, %23, %30 : vector<1x32xf32>
    %32 = arith.select %31, %21, %29 : vector<1x32xi1>, vector<1x32xf32>
    %33 = vector.shape_cast %32 : vector<1x32xf32> to vector<1x1x32xf32>
    %c0_18 = arith.constant 0 : index
    %c0_19 = arith.constant 0 : index
    %c0_20 = arith.constant 0 : index
    %34 = vector.load %arg6[%c0_18, %c0_19, %c0_20] : memref<1x1x32xf32, #tpu.memory_space<vmem>>, vector<1x1x32xf32>
    tpu.vector_store %arg6[%c0_18, %c0_19, %c0_20], %33 {strides = array<i32>} : memref<1x1x32xf32, #tpu.memory_space<vmem>>, vector<1x1x32xf32>,
    return
  }
  func.func @transform_0(%arg0: i32) -> (i32, i32) {
    %c0_i32 = arith.constant 0 : i32
    %c0_i32_0 = arith.constant 0 : i32
    return %arg0, %c0_i32 : i32, i32
  }
  func.func @transform_1(%arg0: i32) -> (i32, i32) {
    %c0_i32 = arith.constant 0 : i32
    %c0_i32_0 = arith.constant 0 : i32
    %c0_i32_1 = arith.constant 0 : i32
    return %c0_i32, %c0_i32_0 : i32, i32
  }
  func.func @transform_2(%arg0: i32) -> (i32, i32) {
    %c0_i32 = arith.constant 0 : i32
    %c0_i32_0 = arith.constant 0 : i32
    %c0_i32_1 = arith.constant 0 : i32
    return %c0_i32, %c0_i32_0 : i32, i32
  }
  func.func @transform_3(%arg0: i32) -> (i32, i32) {
    %c0_i32 = arith.constant 0 : i32
    %c0_i32_0 = arith.constant 0 : i32
    %c0_i32_1 = arith.constant 0 : i32
    return %c0_i32, %c0_i32_0 : i32, i32
  }
  func.func @transform_4(%arg0: i32) -> (i32, i32) {
    %c0_i32 = arith.constant 0 : i32
    %c0_i32_0 = arith.constant 0 : i32
    %c0_i32_1 = arith.constant 0 : i32
    return %c0_i32, %c0_i32_0 : i32, i32
  }
  func.func @transform_5(%arg0: i32) -> (i32, i32, i32) {
    %c0_i32 = arith.constant 0 : i32
    %c0_i32_0 = arith.constant 0 : i32
    %c0_i32_1 = arith.constant 0 : i32
    return %arg0, %c0_i32, %c0_i32_0 : i32, i32, i32
  }
}

</mosaic_0001>

<bundles_post_ra>
// kernel: tpu_custom_call.1
= control target key start
LH: loop header
LB: loop body
LE: loop exit
PB: predicated region body
PF: predicated region fallthrough
CT: control target
= control target key end

     0   :  { %s993_s0 = inlined_call_operand.vmem [shape: f32[100,17], index: 0, kind: input, shape index: {}]   ;;  %s994_s1 = inlined_call_operand.vmem [shape: f32[17,34], index: 1, kind: input, shape index: {}]   ;;  %s995_s2 = inlined_call_operand.vmem [shape: f32[1,34], index: 2, kind: input, shape index: {}]   ;;  %s996_s3 = inlined_call_operand.vmem [shape: f32[1,34], index: 3, kind: input, shape index: {}]   ;;  %s997_s4 = inlined_call_operand.<no memory space> [shape: f32[1,1], index: 4, kind: input, shape index: {}]   ;;  %s998_s5 = inlined_call_operand.hbm [shape: f32[4,1,32], index: 5, kind: output, shape index: {}]  }
   0x1   :  { %v10_v0 = vstv %s997_s4 }
   0x2   :  { %11 = vst [vmem:[#allocation2] sm:$0x1] %v10_v0 }
   0x3   :  { %12 = vsyncpa [#allocation4], 0 }
   0x4   :  { %14 = vsyncpa [#allocation4 + $0x1], 0  ;;  %s842_s20 = smov 0   ;;  %s844_s21 = smov 0  }
   0x5   :  { %s846_s22 = smov 0   ;;  %s848_s23 = smov 0  }
   0x6 LB: > { %s863_s4 = sadd.s32 4294967295, %s802_s23   ;;  %s609_s24 = sadd.s32 4294967294, %s802_s23   ;;  %s802_s23 = sphi %s848_s23, %s1004_s23   ;;  %s798_s22 = sphi %s846_s22, %s1003_s22   ;;  %s794_s21 = sphi %s844_s21, %s1002_s21   ;;  %s790_s20 = sphi %s842_s20, %s1001_s20  }
   0x7   : > { %s867_s25 = sadd.s32 1, %s802_s23   ;;  %s137_s26 = sadd.s32 1, %s798_s22 }
   0x8   : > { %s134_s27 = ssub.s32 %s802_s23, %s867_s25  ;;  %p147_p0 = scmp.ne.s32.totalorder %s798_s22, %s794_s21 }
   0x9   : > { %p135_p1 = scmp.eq.s32.totalorder %s134_s27, 0  ;;  %p148_p2 = scmp.eq.s32.totalorder %s863_s4, 3 }
   0xa   : > { %p153_p3 = scmp.ne.s32.totalorder %s794_s21, %s790_s20  ;;  %p154_p4 = scmp.eq.s32.totalorder %s609_s24, 3 }
   0xb   : > { %s878_s28 = scalar_select %p135_p1, %s798_s22, %s137_s26  }
   0xc   : > { %p880_p5 = por %p148_p2, %p147_p0  ;;  %p884_p6 = por %p154_p4, %p153_p3 }
   0xd   : > { %p612_p7 = scmp.ge.s32.totalorder %s802_s23, 1  ;;  %p201_p8 = scmp.lt.s32.totalorder %s802_s23, 5 }
   0xf   : > { %p202_p9 = pnand %p612_p7, %p201_p8 }
  0x10   : > { %v250_v1 = vld [vmem:[%s994_s1] sm:$0xff] (!%p202_p9)  ;;  %v251_v2 = vld [vmem:[%s994_s1 + $0x8] sm:$0xff] (!%p202_p9)  ;;  %s613_s10 = sshll.u32 (!%p202_p9), %s863_s4, 2  ;;  %v252_v4 = vld [vmem:[%s994_s1 + $0x10] sm:$0x1] (!%p202_p9)  ;;  %vm273_vm0 = vcmask (!%p202_p9), 1040384  }
  0x11   : > { %205 = sbr.rel (%p202_p9) target bundleno = 561 (0x231), region = 40  ;;  %v664_v3 = vpack.c.bf16 (!%p202_p9), %v251_v2, %v250_v1  ;;  %p237_p10 = scmp.lt.s32.totalorder (!%p202_p9), %s613_s10, 12  ;;  %vm260_vm1 = vcmask (!%p202_p9), 138240   ;;  %v804_v9 = vmov (!%p202_p9), 0.0|0.0   ;;  %vm805_vm2 = vmmov (!%p202_p9), 0  }
  0x12   : > { %668 = vmatprep.subr.bf16.mxu1 (!%p202_p9), %v804_v9  ;;  %v806_v10 = vmov (!%p202_p9), 0.0   ;;  %v427_v11 = vld [vmem:[#allocation2] sm:$0x1] (!%p202_p9)  ;;  %v807_v12 = vmov (!%p202_p9), 0   ;;  %vm437_vm6 = vcmask (!%p202_p9), 277504   ;;  %s230_s26 = sand.u32 (!%p202_p9), 1, %s794_s21  }
  0x13   : > { %665 = vmatprep.subr.bf16.mxu0 (!%p202_p9), %v664_v3  ;;  %661 = vmatprep.mubr.msk.f32.mxu1 (!%p202_p9), %vm805_vm2, %v806_v10  ;;  %v615_v13 = vld [vmem:[%s995_s2] ss:$0 sm:$0xff] (!%p202_p9)  ;;  %vm670_vm10 = vmpackc.low (!%p202_p9), %vm437_vm6, %vm437_vm6  ;;  %s626_s27 = sshll.u32 (!%p202_p9), %s863_s4, 4  ;;  %s231_s6 = scalar_lea.vmem (!%p202_p9), [#allocation3], %s230_s26  ;;  %vm539_vm14 = vcmask (!%p202_p9), 253952  }
  0x14   : > { %667 = vmatpush3.bf16.msra.mxu0 (!%p202_p9), %v664_v3  ;;  %719 = vset.pattern.permute.xlu0 (!%p202_p9), %v807_v12  ;;  %s554_s7 = sshll.u32 (!%p202_p9), %s231_s6, 4  ;;  %s542_s11 = scalar_lea.sflag (!%p202_p9), [#allocation4], %s230_s26  ;;  %s953_s7 = int_to_ptr.vmem [resolvable:$true] %s554_s7 }
  0x15   : > { %645 = vmatprep.subr.msk.mxu0 (!%p202_p9), %vm273_vm0, %v252_v4  ;;  %430 = vperm.xlu0 (!%p202_p9), %719, %v427_v11   ;;  %s740_s4 = scalar_lea.vmem (!%p202_p9), %s953_s7, 16  ;;  %s808_s12 = smov (!%p202_p9), [#allocation3]  }
  0x16   : > { %p741_p11 = scmp.ne.s32.totalorder (!%p202_p9), %s953_s7, %s740_s4 }
  0x18   : > { %s1006_s10 = smov (!%p237_p10, %s613_s10), 12  ;;  %646 = vmatpush3.msk.msra.mxu0 %vm273_vm0, %v252_v4  ;;  %p742_p12 = pnand %p741_p11, %p880_p5 }
  0x19   : > { %s614_s13 = sshll.u32 %s1006_s10, 3  ;;  %s951_s10 = scalar_lea.hbm %s998_s5, %s626_s27 }
  0x1a   : > { %s240_s16 = scalar_lea.vmem %s993_s0, %s614_s13  ;;  %p743_p13 = pneg %p742_p12 }
  0x1b   : > { %v246_v5 = vld [vmem:[%s240_s16] sm:$0xff]  ;;  %v247_v6 = vld [vmem:[%s240_s16 + $0x8] sm:$0xff]  ;;  %v248_v7 = vld [vmem:[%s240_s16 + $0x10] sm:$0xff]  ;;  %s744_s13 = sshll.u32 %s808_s12, 4  ;;  %s745_s13 = int_to_ptr.vmem [resolvable:$false] %s744_s13 }
  0x1c   : > { %647 = vmatprep.mubr.msk.f32.mxu0 %vm260_vm1, %v246_v5  ;;  %v249_v8 = vld [vmem:[%s240_s16 + $0x18] sm:$0xff]  ;;  %s746_s14 = scalar_lea.vmem %s745_s13, 32  ;;  %p747_p0 = scmp.lt.s32.totalorder %s953_s7, %s745_s13 }
  0x1d   : > { %648 = vmatmul.mubr.msk.f32.vlgmr.msra.gmra.mrb[0].mxu0 %vm260_vm1, %v247_v6  ;;  %p748_p1 = scmp.lt.s32.totalorder %s746_s14, %s740_s4 }
  0x1e   : > { %650 = vmatprep.mubr.msk.f32.mxu0 %vm260_vm1, %v248_v7 }
  0x1f   : > { %p749_p2 = por %p748_p1, %p747_p0 }
  0x21   : > { %651 = vmatmul.mubr.msk.f32.gmra.mrb[2].mxu0 %vm260_vm1, %v249_v8  ;;  %p750_p3 = pnand %p749_p2, %p743_p13 }
  0xf0   : > { %v649_v14 = vpop.f32.mrb[0].mxu0 }
  0xf1   : > { %v907_v15 = vadd.f32 %v649_v14, %v615_v13  ;;  %v343_v16 = vpop.f32.mrb[1].mxu0 }
  0xf2   : > { %v909_v17 = vadd.f32 %v615_v13, %v343_v16 }
  0xf3   : > { %v912_v18 = vmul.f32 500.0, %v907_v15 }
  0xf4   : > { %v915_v19 = vmul.f32 500.0, %v909_v17  ;;  %v652_v20 = vpop.f32.mrb[2].mxu0 }
  0xf5   : > { %v367_v21 = vmin.f32 %v912_v18, 20.0  ;;  %v918_v22 = vadd.f32 %v652_v20, %v615_v13  ;;  %v353_v23 = vpop.f32.mrb[3].mxu0  ;;  %vm419_vm5 = vcmp.gt.f32.partialorder %v912_v18, 20.0  ;;  %v433_v18 = vlaneseq }
  0xf6   : > { %v366_v24 = vmin.f32 %v915_v19, 20.0  ;;  %v921_v25 = vadd.f32 %v615_v13, %v353_v23  ;;  %vm418_vm7 = vcmp.gt.f32.partialorder %v915_v19, 20.0 }
  0xf7   : > { %v372_v26 = vmul.f32 1.442695, %v367_v21  ;;  %v924_v27 = vmul.f32 500.0, %v918_v22  ;;  %v434_v19 = vshrl.u32 %v433_v18, 7  ;;  %v431_v21 = vpop.permute.xlu0 %430 }
  0xf8   : > { %v370_v28 = vmul.f32 1.442695, %v366_v24  ;;  %v927_v29 = vmul.f32 500.0, %v921_v25 }
  0xf9   : > { %720 = vpow2.f32 %v372_v26  ;;  %v369_v30 = vmin.f32 %v924_v27, 20.0  ;;  %vm421_vm11 = vcmp.gt.f32.partialorder %v924_v27, 20.0  ;;  %v435_v20 = vsub.s32 0, %v434_v19 }
  0xfa   : > { %722 = vpow2.f32 %v370_v28  ;;  %v368_v31 = vmin.f32 %v927_v29, 20.0  ;;  %vm420_vm12 = vcmp.gt.f32.partialorder %v927_v29, 20.0 }
  0xfb   : > { %v376_v32 = vmul.f32 1.442695, %v369_v30 }
  0xfc   : > { %v374_v33 = vmul.f32 1.442695, %v368_v31 }
  0xfd   : > { %724 = vpow2.f32 %v376_v32 }
  0xfe   : > { %726 = vpow2.f32 %v374_v33 }
 0x103   : > { %v721_v34 = vpop.eup %720 }
 0x104   : > { %v723_v35 = vpop.eup %722  ;;  %v387_v36 = vadd.f32 1.0, %v721_v34  ;;  %v390_v42 = vmul.f32 -0.5, %v721_v34  ;;  %v393_v46 = vand.u32 2147483647, %v721_v34 }
 0x105   : > { %v378_v37 = vadd.f32 1.0, %v723_v35  ;;  %v381_v43 = vmul.f32 -0.5, %v723_v35  ;;  %v384_v49 = vand.u32 2147483647, %v723_v35 }
 0x106   : > { %728 = vlog2.f32 %v387_v36  ;;  %v391_v45 = vadd.f32 1.0, %v390_v42  ;;  %vm394_vm3 = vcmp.lt.f32.partialorder %v393_v46, 0.0004427343 }
 0x107   : > { %v725_v38 = vpop.eup %724  ;;  %730 = vlog2.f32 %v378_v37  ;;  %v382_v48 = vadd.f32 1.0, %v381_v43  ;;  %vm385_vm4 = vcmp.lt.f32.partialorder %v384_v49, 0.0004427343 }
 0x108   : > { %v727_v39 = vpop.eup %726  ;;  %v405_v40 = vadd.f32 1.0, %v725_v38  ;;  %v408_v44 = vmul.f32 -0.5, %v725_v38  ;;  %v392_v54 = vmul.f32 %v721_v34, %v391_v45  ;;  %v411_v55 = vand.u32 2147483647, %v725_v38 }
 0x109   : > { %v396_v41 = vadd.f32 1.0, %v727_v39  ;;  %v399_v47 = vmul.f32 -0.5, %v727_v39  ;;  %v383_v58 = vmul.f32 %v723_v35, %v382_v48  ;;  %v402_v59 = vand.u32 2147483647, %v727_v39 }
 0x10a   : > { %732 = vlog2.f32 %v405_v40  ;;  %v409_v52 = vadd.f32 1.0, %v408_v44  ;;  %vm412_vm8 = vcmp.lt.f32.partialorder %v411_v55, 0.0004427343 }
 0x10b   : > { %734 = vlog2.f32 %v396_v41  ;;  %v400_v56 = vadd.f32 1.0, %v399_v47  ;;  %vm403_vm9 = vcmp.lt.f32.partialorder %v402_v59, 0.0004427343 }
 0x10c   : > { %v410_v2 = vmul.f32 %v725_v38, %v409_v52 }
 0x10d   : > { %v401_v5 = vmul.f32 %v727_v39, %v400_v56 }
 0x110   : > { %v729_v50 = vpop.eup %728 }
 0x111   : > { %v731_v51 = vpop.eup %730  ;;  %v389_v53 = vmul.f32 0.6931472, %v729_v50 }
 0x112   : > { %v380_v57 = vmul.f32 0.6931472, %v731_v51 }
 0x113   : > { %v395_v60 = vsel %vm394_vm3, %v392_v54, %v389_v53 }
 0x114   : > { %v733_v61 = vpop.eup %732  ;;  %v386_v62 = vsel %vm385_vm4, %v383_v58, %v380_v57  ;;  %v415_v63 = vmul.f32 0.002, %v395_v60 }
 0x115   : > { %v735_v0 = vpop.eup %734  ;;  %v407_v1 = vmul.f32 0.6931472, %v733_v61  ;;  %v414_v3 = vmul.f32 0.002, %v386_v62 }
 0x116   : > { %v398_v4 = vmul.f32 0.6931472, %v735_v0  ;;  %v423_v6 = vsel %vm419_vm5, %v907_v15, %v415_v63 }
 0x117   : > { %v413_v7 = vsel %vm412_vm8, %v410_v2, %v407_v1  ;;  %v422_v8 = vsel %vm418_vm7, %v909_v17, %v414_v3  ;;  %v426_v17 = vld [vmem:[%s996_s3] sm:$0x1] }
 0x118   : > { %v417_v10 = vmul.f32 0.002, %v413_v7  ;;  %v404_v11 = vsel %vm403_vm9, %v401_v5, %v398_v4  ;;  %v669_v12 = vpack.c.bf16 %v423_v6, %v422_v8 }
 0x119   : > { %v416_v13 = vmul.f32 0.002, %v404_v11 }
 0x11a   : > { %v425_v14 = vsel %vm421_vm11, %v918_v22, %v417_v10  ;;  %671 = vmatpush3.bf16.xpose.msk.msra.mxu1 %vm670_vm10, %v669_v12  ;;  %v436_v22 = vrot.slane %v431_v21, %v435_v20 }
 0x11b   : > { %v424_v15 = vsel %vm420_vm12, %v921_v25, %v416_v13  ;;  %672 = vmatprep.subr.bf16.mxu1 %v804_v9 }
 0x11c   : > { %v673_v16 = vpack.c.bf16 %v425_v14, %v424_v15 }
 0x122   : > { %675 = vmatpush3.bf16.xpose.msk.msra.mxu1 %vm670_vm10, %v673_v16 }
 0x129   : > { %662 = vmatmul.mubr.msk.f32.vlgmr.msra.gmra.mrb[0].mxu1 %vm437_vm6, %v426_v17 }
 0x1fc   : > { %v519_v23 = vpop.f32.mrb[0].mxu1 }
 0x1fd   : > { %v520_v24 = vadd.f32 %v519_v23, %v436_v22  ;;  %v663_v26 = vpop.f32.mrb[1].mxu1 }
 0x1ff   : > { %v523_v25 = vmul.f32 500.0, %v520_v24 }
 0x201   : > { %v524_v9 = vmin.f32 %v523_v25, 20.0  ;;  %vm537_vm15 = vcmp.gt.f32.partialorder %v523_v25, 20.0 }
 0x203   : > { %v525_v27 = vmul.f32 1.442695, %v524_v9 }
 0x205   : > { %736 = vpow2.f32 %v525_v27 }
 0x20f   : > { %v737_v28 = vpop.eup %736 }
 0x210   : > { %v527_v29 = vadd.f32 1.0, %v737_v28  ;;  %v530_v30 = vmul.f32 -0.5, %v737_v28  ;;  %v533_v32 = vand.u32 2147483647, %v737_v28 }
 0x212   : > { %738 = vlog2.f32 %v527_v29  ;;  %v531_v31 = vadd.f32 1.0, %v530_v30  ;;  %vm534_vm13 = vcmp.lt.f32.partialorder %v533_v32, 0.0004427343 }
 0x214   : > { %v532_v35 = vmul.f32 %v737_v28, %v531_v31 }
 0x21c   : > { %v739_v33 = vpop.eup %738 }
 0x21d   : > { %v529_v34 = vmul.f32 0.6931472, %v739_v33 }
 0x21f   : > { %v535_v36 = vsel %vm534_vm13, %v532_v35, %v529_v34 }
 0x220   : > { %v536_v37 = vmul.f32 0.002, %v535_v36 }
 0x222   : > { %v538_v38 = vsel %vm537_vm15, %v520_v24, %v536_v37 }
 0x223   : > { %540 = vst.msk [vmem:[%s231_s6] sm:$0x1] %vm539_vm14, %v538_v38 }
 0x224   : > { %753 = shalt.err (!%p750_p3)
}
 0x225   : > { %s754_s15 = scalar_lea.hbm %s951_s10, 16  ;;  %s758_s18 = scalar_lea.hbm %s998_s5, 64 }
 0x226   : > { %p755_p4 = scmp.ne.s32.totalorder %s951_s10, %s754_s15  ;;  %p759_p9 = scmp.lt.u32.totalorder %s951_s10, %s998_s5 }
 0x227   : > { %p760_p10 = scmp.lt.u32.totalorder %s758_s18, %s754_s15  ;;  %p762_p12 = scmp.lt.u32.totalorder %s754_s15, %s951_s10 }
 0x228   : > { %p756_p7 = pnand %p755_p4, %p880_p5 }
 0x229   : > { %p761_p11 = por %p760_p10, %p759_p9 }
 0x22a   : > { %p757_p8 = pneg %p756_p7 }
 0x22b   : > { %p763_p13 = por %p762_p12, %p761_p11 }
 0x22d   : > { %p764_p0 = pnand %p763_p13, %p757_p8 }
 0x22f   : > { %767 = shalt.err (!%p764_p0)
}
 0x230   : > { %676 = dma.vmem_to_hbm [thread:$0]  (%p880_p5), %s953_s7, 16, %s951_s10, %s542_s11  }
 0x231 PF: > { %p682_p1 = scmp.ge.s32.totalorder %s802_s23, 2  ;;  %s566_s26 = sand.u32 1, %s790_s20  }
 0x232   : > { %s567_s27 = scalar_lea.sflag [#allocation4], %s566_s26 }
 0x233   : > { %p679_p2 = pnand %p682_p1, %p884_p6 }
 0x235   : > { %785 = dma.done.wait (!%p679_p2), %s567_s27, 16  }
 0x236   : > { %787 = vsyncadd (!%p679_p2), %s567_s27, 4294967280  ;;  %p17_p3 = scmp.ge.s32.totalorder %s867_s25, 6   ;;  %s1001_s20 = smov %s794_s21 }
 0x237   : > { %s1002_s21 = smov %s798_s22  ;;  %s1003_s22 = smov %s878_s28 }
 0x238   : > { %s1004_s23 = smov %s867_s25  ;;  %19 = sbr.rel (!%p17_p3) target bundleno = 6 (0x6), region = 75 }
 0x23f   :  { %571 = vsyncpa [#allocation4], 1 }
 0x240   :  { %573 = vsyncpa [#allocation4 + $0x1], 1 }

</bundles_post_ra>
